<compile_context>
chip_gen: v7x
topology: tpu7x:2x2x1
jax: 0.10.0
libtpu: 0.0.40
codegen_flags: <defaults>
</compile_context>

<pallas_src>
import functools

import jax
import jax.numpy as jnp
from jax.experimental import pallas as pl
from jax.experimental.pallas import tpu as pltpu

LANE = 128
SUBLANE = 8


def _round_up(x, m):
    return ((x + m - 1) // m) * m


def make_actor_kernel(max_action: float, action_dim: int):
    def actor_kernel(s_ref, w1_ref, b1_ref, w2_ref, b2_ref, w3_ref, b3_ref,
                     o_ref):
        # Layer 1: Linear(state_dim -> 512 (pad of 400)) + ReLU.
        h1 = jnp.dot(s_ref[...].astype(w1_ref.dtype), w1_ref[...],
                     preferred_element_type=jnp.float32)
        h1 = jnp.maximum(h1 + b1_ref[...], 0.0)

        # Layer 2: Linear(512 -> 384 (pad of 300)) + ReLU.
        h2 = jnp.dot(h1.astype(w2_ref.dtype), w2_ref[...],
                     preferred_element_type=jnp.float32)
        h2 = jnp.maximum(h2 + b2_ref[...], 0.0)

        # Layer 3: Linear(384 -> 128 (pad of action_dim)) + tanh + scale.
        h3 = jnp.dot(h2.astype(w3_ref.dtype), w3_ref[...],
                     preferred_element_type=jnp.float32)
        a = max_action * jnp.tanh(h3 + b3_ref[...])
        # Only the real action lanes go back to HBM (narrow masked store).
        o_ref[...] = a[:, :action_dim].astype(o_ref.dtype)

    return actor_kernel


def init_params(key, state_dim, action_dim):
    """Deterministic synthetic parameters (PyTorch-like uniform fan-in init)."""
    ks = jax.random.split(key, 6)

    def linear(kw, kb, fan_in, fan_out):
        bound = 1.0 / jnp.sqrt(fan_in)
        # Stored as (in, out): transpose of torch's (out, in) layout.
        w = jax.random.uniform(kw, (fan_in, fan_out), jnp.float32,
                               minval=-bound, maxval=bound)
        b = jax.random.uniform(kb, (1, fan_out), jnp.float32,
                               minval=-bound, maxval=bound)
        return w, b

    w1, b1 = linear(ks[0], ks[1], state_dim, 400)
    w2, b2 = linear(ks[2], ks[3], 400, 300)
    w3, b3 = linear(ks[4], ks[5], 300, action_dim)
    return {"w1": w1, "b1": b1, "w2": w2, "b2": b2, "w3": w3, "b3": b3}


def pad_and_cast_params(params, weight_dtype=jnp.bfloat16):
    """Zero-pad hidden/output feature dims to lane multiples; weights -> bf16.

    The state (K of layer 1) dim is deliberately left unpadded.  Padding is
    exact: padded weight columns + zero biases give exactly-zero hidden
    pre-activations, and the matching padded weight rows of the next layer are
    zero, so the real (un-padded) outputs are unaffected.
    """
    def pad2(a, rows, cols):
        out = jnp.zeros((rows, cols), a.dtype)
        return out.at[:a.shape[0], :a.shape[1]].set(a)

    state_dim = params["w1"].shape[0]
    h1_pad = _round_up(params["w1"].shape[1], LANE)  # 400 -> 512
    h2_pad = _round_up(params["w2"].shape[1], LANE)  # 300 -> 384
    a_pad = _round_up(params["w3"].shape[1], LANE)   # 8   -> 128

    return {
        "w1": pad2(params["w1"], state_dim, h1_pad).astype(weight_dtype),
        "b1": pad2(params["b1"], 1, h1_pad).astype(jnp.float32),
        "w2": pad2(params["w2"], h1_pad, h2_pad).astype(weight_dtype),
        "b2": pad2(params["b2"], 1, h2_pad).astype(jnp.float32),
        "w3": pad2(params["w3"], h2_pad, a_pad).astype(weight_dtype),
        "b3": pad2(params["b3"], 1, a_pad).astype(jnp.float32),
    }


@functools.partial(jax.jit,
                   static_argnames=("action_dim", "max_action", "tile_b"))
def actor_forward(state, padded_params, *, action_dim, max_action,
                  tile_b=512):
    """state: (B, state_dim) f32. padded_params: output of pad_and_cast_params."""
    B, state_dim = state.shape
    p = padded_params

    # Batch tile: multiple of 8 (sublane); whole batch in one block when
    # small, otherwise stream tiles over a "parallel" grid.  For B > 128 make
    # sure there are at least 2 grid steps so both v7x TensorCores get work,
    # and adapt the tile so round-up waste in the ragged last block is small.
    rows = _round_up(B, SUBLANE)
    if rows <= 128:
        tile = rows
    else:
        tile = min(tile_b, _round_up((rows + 1) // 2, SUBLANE))
    grid = (pl.cdiv(B, tile),)

    # Weights / biases: constant index_map -> stay VMEM-resident across steps.
    resident = lambda shape: pl.BlockSpec(shape, lambda i: (0, 0))

    weight_bytes = sum(int(v.size) * v.dtype.itemsize for v in p.values())
    cost = pl.CostEstimate(
        flops=2 * B * (state_dim * p["w1"].shape[1]
                       + p["w2"].shape[0] * p["w2"].shape[1]
                       + p["w3"].shape[0] * p["w3"].shape[1]),
        transcendentals=B * p["w3"].shape[1],
        bytes_accessed=weight_bytes + B * (state_dim + action_dim) * 4,
    )

    out = pl.pallas_call(
        make_actor_kernel(float(max_action), int(action_dim)),
        out_shape=jax.ShapeDtypeStruct((B, action_dim), jnp.float32),
        grid=grid,
        in_specs=[
            pl.BlockSpec((tile, state_dim), lambda i: (i, 0)),  # streamed state
            resident(p["w1"].shape), resident(p["b1"].shape),
            resident(p["w2"].shape), resident(p["b2"].shape),
            resident(p["w3"].shape), resident(p["b3"].shape),
        ],
        out_specs=pl.BlockSpec((tile, action_dim), lambda i: (i, 0)),
        compiler_params=pltpu.CompilerParams(
            dimension_semantics=("parallel",),
            vmem_limit_bytes=32 << 20,
        ),
        cost_estimate=cost,
    )(state, p["w1"], p["b1"], p["w2"], p["b2"], p["w3"], p["b3"])

    return out


def actor_reference_f32(state, params, max_action):
    a = jnp.maximum(state @ params["w1"] + params["b1"], 0.0)
    a = jnp.maximum(a @ params["w2"] + params["b2"], 0.0)
    return max_action * jnp.tanh(a @ params["w3"] + params["b3"])


def actor_reference_bf16(state, params, max_action):
    """Mirrors the kernel's dtype strategy: bf16 matmul operands, f32 accum."""
    def lin(x, w, b):
        return jnp.dot(x.astype(jnp.bfloat16), w.astype(jnp.bfloat16),
                       preferred_element_type=jnp.float32) + b
    a = jnp.maximum(lin(state, params["w1"], params["b1"]), 0.0)
    a = jnp.maximum(lin(a, params["w2"], params["b2"]), 0.0)
    return max_action * jnp.tanh(lin(a, params["w3"], params["b3"]))


if __name__ == "__main__":
    key = jax.random.PRNGKey(0)
    k_state, k_state2, k_params = jax.random.split(key, 3)

    state_dim = 16
    action_dim = 8
    max_action = 2.0

    params = init_params(k_params, state_dim, action_dim)
    padded = pad_and_cast_params(params)

    # --- Small batch: single grid step, exact (8, 16) state block. ---
    batch = 8
    state = jax.random.normal(k_state, (batch, state_dim), jnp.float32)
    out = actor_forward(state, padded, action_dim=action_dim,
                        max_action=max_action)
    out = jax.block_until_ready(out)
    assert out.shape == (batch, action_dim), out.shape

    # Tight check vs a reference using the same bf16-operand / f32-accum math.
    ref_bf16 = actor_reference_bf16(state, params, max_action)
    err = float(jnp.max(jnp.abs(out - ref_bf16)))
    assert jnp.allclose(out, ref_bf16, atol=2e-3, rtol=2e-3), err

    # Loose sanity check vs the pure-f32 PyTorch-equivalent reference
    # (difference is bf16 weight/activation rounding only).
    ref_f32 = actor_reference_f32(state, params, max_action)
    err32 = float(jnp.max(jnp.abs(out - ref_f32)))
    assert jnp.allclose(out, ref_f32, atol=5e-2, rtol=5e-2), err32

    # --- Larger, non-tile-multiple batch: 2 parallel grid steps with a
    # ragged last block (exercises the masked-overhang path). ---
    batch2 = 260
    state2 = jax.random.normal(k_state2, (batch2, state_dim), jnp.float32)
    out2 = actor_forward(state2, padded, action_dim=action_dim,
                         max_action=max_action)
    out2 = jax.block_until_ready(out2)
    assert out2.shape == (batch2, action_dim), out2.shape

    ref2 = actor_reference_bf16(state2, params, max_action)
    err2 = float(jnp.max(jnp.abs(out2 - ref2)))
    assert jnp.allclose(out2, ref2, atol=2e-3, rtol=2e-3), err2

    print("KERNEL_OK")
</pallas_src>

<mosaic_0001>
module attributes {stable_mosaic.version = 11 : i64} {
  func.func @actor_kernel(%arg0: i32, %arg1: memref<8x16xf32, #tpu.memory_space<vmem>>, %arg2: memref<16x512xbf16, #tpu.memory_space<vmem>>, %arg3: memref<1x512xf32, #tpu.memory_space<vmem>>, %arg4: memref<512x384xbf16, #tpu.memory_space<vmem>>, %arg5: memref<1x384xf32, #tpu.memory_space<vmem>>, %arg6: memref<384x128xbf16, #tpu.memory_space<vmem>>, %arg7: memref<1x128xf32, #tpu.memory_space<vmem>>, %arg8: memref<8x8xf32, #tpu.memory_space<vmem>>) attributes {dimension_semantics = [#tpu.dimension_semantics<parallel>], iteration_bounds = array<i64: 1>, scalar_prefetch = 0 : i64, scratch_operands = 0 : i64, tpu.core_type = #tpu.core_type<tc>, window_params = [{transform_indices = @transform_0, window_bounds = array<i64: 8, 16>}, {pipeline_mode = #tpu.pipeline_mode<synchronous>, transform_indices = @transform_1, window_bounds = array<i64: 16, 512>}, {pipeline_mode = #tpu.pipeline_mode<synchronous>, transform_indices = @transform_2, window_bounds = array<i64: 1, 512>}, {pipeline_mode = #tpu.pipeline_mode<synchronous>, transform_indices = @transform_3, window_bounds = array<i64: 512, 384>}, {pipeline_mode = #tpu.pipeline_mode<synchronous>, transform_indices = @transform_4, window_bounds = array<i64: 1, 384>}, {pipeline_mode = #tpu.pipeline_mode<synchronous>, transform_indices = @transform_5, window_bounds = array<i64: 384, 128>}, {pipeline_mode = #tpu.pipeline_mode<synchronous>, transform_indices = @transform_6, window_bounds = array<i64: 1, 128>}, {transform_indices = @transform_7, window_bounds = array<i64: 8, 8>}]} {
    %c0 = arith.constant 0 : index
    %c0_0 = arith.constant 0 : index
    %0 = vector.load %arg1[%c0, %c0_0] : memref<8x16xf32, #tpu.memory_space<vmem>>, vector<8x16xf32>
    %1 = arith.truncf %0 : vector<8x16xf32> to vector<8x16xbf16>
    %c0_1 = arith.constant 0 : index
    %c0_2 = arith.constant 0 : index
    %2 = vector.load %arg2[%c0_1, %c0_2] : memref<16x512xbf16, #tpu.memory_space<vmem>>, vector<16x512xbf16>
    %cst = arith.constant dense<0.000000e+00> : vector<8x512xf32>
    %3 = tpu.matmul %1, %2, %cst {dimension_numbers = #tpu.dot_dimension_numbers<[1], [0], [0], [1], [0, 0, 1, 1], [], []>} : vector<8x16xbf16>, vector<16x512xbf16>, vector<8x512xf32> -> vector<8x512xf32>
    %c0_3 = arith.constant 0 : index
    %c0_4 = arith.constant 0 : index
    %4 = vector.load %arg3[%c0_3, %c0_4] : memref<1x512xf32, #tpu.memory_space<vmem>>, vector<1x512xf32>
    %5 = vector.broadcast %4 : vector<1x512xf32> to vector<8x512xf32>
    %6 = arith.addf %3, %5 : vector<8x512xf32>
    %cst_5 = arith.constant 0.000000e+00 : f32
    %7 = vector.broadcast %cst_5 : f32 to vector<8x512xf32>
    %8 = arith.maximumf %6, %7 : vector<8x512xf32>
    %9 = arith.truncf %8 : vector<8x512xf32> to vector<8x512xbf16>
    %c0_6 = arith.constant 0 : index
    %c0_7 = arith.constant 0 : index
    %10 = vector.load %arg4[%c0_6, %c0_7] : memref<512x384xbf16, #tpu.memory_space<vmem>>, vector<512x384xbf16>
    %cst_8 = arith.constant dense<0.000000e+00> : vector<8x384xf32>
    %11 = tpu.matmul %9, %10, %cst_8 {dimension_numbers = #tpu.dot_dimension_numbers<[1], [0], [0], [1], [0, 0, 1, 1], [], []>} : vector<8x512xbf16>, vector<512x384xbf16>, vector<8x384xf32> -> vector<8x384xf32>
    %c0_9 = arith.constant 0 : index
    %c0_10 = arith.constant 0 : index
    %12 = vector.load %arg5[%c0_9, %c0_10] : memref<1x384xf32, #tpu.memory_space<vmem>>, vector<1x384xf32>
    %13 = vector.broadcast %12 : vector<1x384xf32> to vector<8x384xf32>
    %14 = arith.addf %11, %13 : vector<8x384xf32>
    %cst_11 = arith.constant 0.000000e+00 : f32
    %15 = vector.broadcast %cst_11 : f32 to vector<8x384xf32>
    %16 = arith.maximumf %14, %15 : vector<8x384xf32>
    %17 = arith.truncf %16 : vector<8x384xf32> to vector<8x384xbf16>
    %c0_12 = arith.constant 0 : index
    %c0_13 = arith.constant 0 : index
    %18 = vector.load %arg6[%c0_12, %c0_13] : memref<384x128xbf16, #tpu.memory_space<vmem>>, vector<384x128xbf16>
    %cst_14 = arith.constant dense<0.000000e+00> : vector<8x128xf32>
    %19 = tpu.matmul %17, %18, %cst_14 {dimension_numbers = #tpu.dot_dimension_numbers<[1], [0], [0], [1], [0, 0, 1, 1], [], []>} : vector<8x384xbf16>, vector<384x128xbf16>, vector<8x128xf32> -> vector<8x128xf32>
    %c0_15 = arith.constant 0 : index
    %c0_16 = arith.constant 0 : index
    %20 = vector.load %arg7[%c0_15, %c0_16] : memref<1x128xf32, #tpu.memory_space<vmem>>, vector<1x128xf32>
    %21 = vector.broadcast %20 : vector<1x128xf32> to vector<8x128xf32>
    %22 = arith.addf %19, %21 : vector<8x128xf32>
    %23 = math.tanh %22 : vector<8x128xf32>
    %cst_17 = arith.constant 2.000000e+00 : f32
    %24 = vector.broadcast %cst_17 : f32 to vector<8x128xf32>
    %25 = arith.mulf %24, %23 : vector<8x128xf32>
    %26 = vector.extract_strided_slice %25 {offsets = [0, 0], sizes = [8, 8], strides = [1, 1]} : vector<8x128xf32> to vector<8x8xf32>
    %c0_18 = arith.constant 0 : index
    %c0_19 = arith.constant 0 : index
    %27 = vector.load %arg8[%c0_18, %c0_19] : memref<8x8xf32, #tpu.memory_space<vmem>>, vector<8x8xf32>
    tpu.vector_store %arg8[%c0_18, %c0_19], %26 {strides = array<i32>} : memref<8x8xf32, #tpu.memory_space<vmem>>, vector<8x8xf32>,
    return
  }
  func.func @transform_0(%arg0: i32) -> (i32, i32) {
    %c0_i32 = arith.constant 0 : i32
    %c0_i32_0 = arith.constant 0 : i32
    return %arg0, %c0_i32 : i32, i32
  }
  func.func @transform_1(%arg0: i32) -> (i32, i32) {
    %c0_i32 = arith.constant 0 : i32
    %c0_i32_0 = arith.constant 0 : i32
    %c0_i32_1 = arith.constant 0 : i32
    return %c0_i32, %c0_i32_0 : i32, i32
  }
  func.func @transform_2(%arg0: i32) -> (i32, i32) {
    %c0_i32 = arith.constant 0 : i32
    %c0_i32_0 = arith.constant 0 : i32
    %c0_i32_1 = arith.constant 0 : i32
    return %c0_i32, %c0_i32_0 : i32, i32
  }
  func.func @transform_3(%arg0: i32) -> (i32, i32) {
    %c0_i32 = arith.constant 0 : i32
    %c0_i32_0 = arith.constant 0 : i32
    %c0_i32_1 = arith.constant 0 : i32
    return %c0_i32, %c0_i32_0 : i32, i32
  }
  func.func @transform_4(%arg0: i32) -> (i32, i32) {
    %c0_i32 = arith.constant 0 : i32
    %c0_i32_0 = arith.constant 0 : i32
    %c0_i32_1 = arith.constant 0 : i32
    return %c0_i32, %c0_i32_0 : i32, i32
  }
  func.func @transform_5(%arg0: i32) -> (i32, i32) {
    %c0_i32 = arith.constant 0 : i32
    %c0_i32_0 = arith.constant 0 : i32
    %c0_i32_1 = arith.constant 0 : i32
    return %c0_i32, %c0_i32_0 : i32, i32
  }
  func.func @transform_6(%arg0: i32) -> (i32, i32) {
    %c0_i32 = arith.constant 0 : i32
    %c0_i32_0 = arith.constant 0 : i32
    %c0_i32_1 = arith.constant 0 : i32
    return %c0_i32, %c0_i32_0 : i32, i32
  }
  func.func @transform_7(%arg0: i32) -> (i32, i32) {
    %c0_i32 = arith.constant 0 : i32
    %c0_i32_0 = arith.constant 0 : i32
    return %arg0, %c0_i32 : i32, i32
  }
}

</mosaic_0001>

<bundles_post_ra>
// kernel: actor_forward.1
= control target key start
LH: loop header
LB: loop body
LE: loop exit
PB: predicated region body
PF: predicated region fallthrough
CT: control target
= control target key end

     0   :  { %12 = vsyncpa [#allocation3], 0  ;;  %s2062_s0 = inlined_call_operand.hbm [shape: f32[8,16], index: 0, kind: input, shape index: {}]   ;;  %s2063_s1 = inlined_call_operand.hbm [shape: bf16[16,512], index: 1, kind: input, shape index: {}]   ;;  %s2064_s2 = inlined_call_operand.hbm [shape: f32[1,512], index: 2, kind: input, shape index: {}]   ;;  %s2065_s3 = inlined_call_operand.hbm [shape: bf16[512,384], index: 3, kind: input, shape index: {}]   ;;  %s2066_s4 = inlined_call_operand.vmem [shape: f32[1,384], index: 4, kind: input, shape index: {}]   ;;  %s2067_s5 = inlined_call_operand.hbm [shape: bf16[384,128], index: 5, kind: input, shape index: {}]   ;;  %s2068_s6 = inlined_call_operand.vmem [shape: f32[1,128], index: 6, kind: input, shape index: {}]   ;;  %s2069_s7 = inlined_call_operand.hbm [shape: f32[8,8], index: 7, kind: output, shape index: {}]  }
   0x1   :  { %13 = vsyncpa [#allocation6], 0 }
   0x2   :  { %14 = vsyncpa [#allocation9], 0 }
   0x3   :  { %15 = vsyncpa [#allocation4], 0  ;;  %s1902_s24 = smov [#allocation5]   ;;  %s1762_s28 = scalar_lea.hbm %s2063_s1, 512 }
   0x4   :  { %s31_s25 = sshll.u32 %s1902_s24, 4  ;;  %p1763_p0 = scmp.ne.s32.totalorder %s2063_s1, %s1762_s28  ;;  %s32_s25 = int_to_ptr.vmem [resolvable:$true] %s31_s25 }
   0x5   :  { %p1766_p1 = scmp.lt.u32.totalorder %s1762_s28, %s2063_s1 }
   0x7   :  { %p1768_p2 = pnand %p1766_p1, %p1763_p0 }
   0x9   :  { %1771 = shalt.err (!%p1768_p2)
}
   0xa   :  { %s1772_s10 = scalar_lea.vmem %s32_s25, 512  ;;  %p1777_p4 = scmp.lt.s32.totalorder %s32_s25, %s32_s25 }
   0xb   :  { %p1773_p3 = scmp.ne.s32.totalorder %s32_s25, %s1772_s10  ;;  %p1778_p5 = scmp.lt.s32.totalorder %s1772_s10, %s1772_s10 }
   0xd   :  { %p1779_p6 = por %p1778_p5, %p1777_p4 }
   0xf   :  { %p1780_p7 = pnand %p1779_p6, %p1773_p3 }
  0x11   :  { %1783 = shalt.err (!%p1780_p7)
}
  0x12   :  { %s1903_s11 = smov 256   ;;  %s1904_s12 = smov 16  }
  0x13   :  { %37 = dma.hbm_to_vmem [thread:$0]  %s2063_s1, 512, %s32_s25, [#allocation6], %s1903_s11, %s1903_s11, %s1904_s12  }
  0x14   :  { %s1905_s15 = smov [#allocation8]   ;;  %s1784_s19 = scalar_lea.hbm %s2065_s3, 12288 }
  0x15   :  { %s53_s16 = sshll.u32 %s1905_s15, 4  ;;  %p1785_p8 = scmp.ne.s32.totalorder %s2065_s3, %s1784_s19  ;;  %s54_s16 = int_to_ptr.vmem [resolvable:$true] %s53_s16 }
  0x16   :  { %p1788_p9 = scmp.lt.u32.totalorder %s1784_s19, %s2065_s3 }
  0x18   :  { %p1790_p10 = pnand %p1788_p9, %p1785_p8 }
  0x1a   :  { %1793 = shalt.err (!%p1790_p10)
}
  0x1b   :  { %s1794_s24 = scalar_lea.vmem %s54_s16, 12288  ;;  %p1799_p12 = scmp.lt.s32.totalorder %s54_s16, %s54_s16 }
  0x1c   :  { %p1795_p11 = scmp.ne.s32.totalorder %s54_s16, %s1794_s24  ;;  %p1800_p13 = scmp.lt.s32.totalorder %s1794_s24, %s1794_s24 }
  0x1e   :  { %p1801_p0 = por %p1800_p13, %p1799_p12 }
  0x20   :  { %p1802_p1 = pnand %p1801_p0, %p1795_p11 }
  0x22   :  { %1805 = shalt.err (!%p1802_p1)
}
  0x23   :  { %s1906_s1 = smov 192   ;;  %s1907_s25 = smov 12  }
  0x24   :  { %59 = dma.hbm_to_vmem [thread:$0]  %s2065_s3, 12288, %s54_s16, [#allocation9], %s1906_s1, %s1906_s1, %s1907_s25  }
  0x25   :  { %s1908_s28 = smov [#allocation2]   ;;  %s1909_s30 = smov [#allocation7]  }
  0x26   :  { %s22_s29 = sshll.u32 %s1908_s28, 4  ;;  %s44_s8 = sshll.u32 %s1909_s30, 4  ;;  %s23_s29 = int_to_ptr.vmem [resolvable:$true] %s22_s29  ;;  %s45_s8 = int_to_ptr.vmem [resolvable:$true] %s44_s8 }
  0x27   :  { %s1806_s11 = scalar_lea.hbm %s2062_s0, 128 }
  0x28   :  { %p1807_p2 = scmp.ne.s32.totalorder %s2062_s0, %s1806_s11  ;;  %p1810_p3 = scmp.lt.u32.totalorder %s1806_s11, %s2062_s0 }
  0x2a   :  { %p1812_p4 = pnand %p1810_p3, %p1807_p2 }
  0x2c   :  { %1815 = shalt.err (!%p1812_p4)
}
  0x2d   :  { %s1816_s3 = scalar_lea.vmem %s23_s29, 128  ;;  %p1821_p6 = scmp.lt.s32.totalorder %s23_s29, %s23_s29 }
  0x2e   :  { %p1817_p5 = scmp.ne.s32.totalorder %s23_s29, %s1816_s3  ;;  %p1822_p7 = scmp.lt.s32.totalorder %s1816_s3, %s1816_s3 }
  0x30   :  { %p1823_p8 = por %p1822_p7, %p1821_p6 }
  0x32   :  { %p1824_p9 = pnand %p1823_p8, %p1817_p5 }
  0x34   :  { %1827 = shalt.err (!%p1824_p9)
}
  0x35   :  { %25 = dma.hbm_to_vmem [thread:$0]  %s2062_s0, 128, %s23_s29, [#allocation3]  }
  0x36   :  { %s1828_s20 = scalar_lea.hbm %s2064_s2, 64 }
  0x37   :  { %p1829_p10 = scmp.ne.s32.totalorder %s2064_s2, %s1828_s20  ;;  %p1832_p11 = scmp.lt.u32.totalorder %s1828_s20, %s2064_s2 }
  0x39   :  { %p1834_p12 = pnand %p1832_p11, %p1829_p10 }
  0x3b   :  { %1837 = shalt.err (!%p1834_p12)
}
  0x3c   :  { %s1838_s1 = scalar_lea.vmem %s45_s8, 64  ;;  %p1843_p0 = scmp.lt.s32.totalorder %s45_s8, %s45_s8 }
  0x3d   :  { %p1839_p13 = scmp.ne.s32.totalorder %s45_s8, %s1838_s1  ;;  %p1844_p1 = scmp.lt.s32.totalorder %s1838_s1, %s1838_s1 }
  0x3f   :  { %p1845_p2 = por %p1844_p1, %p1843_p0 }
  0x41   :  { %p1846_p3 = pnand %p1845_p2, %p1839_p13 }
  0x43   :  { %1849 = shalt.err (!%p1846_p3)
}
  0x44   :  { %47 = dma.hbm_to_vmem [thread:$0]  %s2064_s2, 64, %s45_s8, [#allocation6]  }
  0x45   :  { %s1910_s26 = smov [#allocation10]   ;;  %s1850_s30 = scalar_lea.hbm %s2067_s5, 3072 }
  0x46   :  { %s67_s27 = sshll.u32 %s1910_s26, 4  ;;  %p1851_p4 = scmp.ne.s32.totalorder %s2067_s5, %s1850_s30  ;;  %s68_s27 = int_to_ptr.vmem [resolvable:$true] %s67_s27 }
  0x47   :  { %p1854_p5 = scmp.lt.u32.totalorder %s1850_s30, %s2067_s5 }
  0x49   :  { %p1856_p6 = pnand %p1854_p5, %p1851_p4 }
  0x4b   :  { %1859 = shalt.err (!%p1856_p6)
}
  0x4c   :  { %s1860_s13 = scalar_lea.vmem %s68_s27, 3072  ;;  %p1865_p8 = scmp.lt.s32.totalorder %s68_s27, %s68_s27 }
  0x4d   :  { %p1861_p7 = scmp.ne.s32.totalorder %s68_s27, %s1860_s13  ;;  %p1866_p9 = scmp.lt.s32.totalorder %s1860_s13, %s1860_s13 }
  0x4f   :  { %p1867_p10 = por %p1866_p9, %p1865_p8 }
  0x51   :  { %p1868_p11 = pnand %p1867_p10, %p1861_p7 }
  0x53   :  { %1871 = shalt.err (!%p1868_p11)
}
  0x54   :  { %s1911_s2 = smov 64   ;;  %s1912_s8 = smov 4  }
  0x55   :  { %73 = dma.hbm_to_vmem [thread:$0]  %s2067_s5, 3072, %s68_s27, [#allocation9], %s1911_s2, %s1911_s2, %s1912_s8  }
  0x56   :  { %1894 = dma.done.wait [#allocation3], 128  }
  0x57   :  { %1895 = vsyncadd [#allocation3], 4294967168 }
  0x58   :  { %1896 = dma.done.wait [#allocation6], 576  }
  0x59   :  { %1897 = vsyncadd [#allocation6], 4294966720 }
  0x5a   :  { %1898 = dma.done.wait [#allocation9], 15360  }
  0x5b   :  { %1899 = vsyncadd [#allocation9], 4294951936  ;;  %v1913_v0 = vmov 0   ;;  %v1602_v1 = vld [vmem:[#allocation5 + $0x4] ss:$16 sps:$4 sm:$0xff]   ;;  %v92_v3 = vld [vmem:[#allocation2] sm:$0xff]  ;;  %v100_v57 = vlaneseq }
  0x5c   :  { %176 = vmatprep.mubr.bf16.mxu0 %v1913_v0  ;;  %217 = vmatprep.mubr.bf16.mxu1 %v1913_v0  ;;  %v1604_v2 = vld [vmem:[#allocation5] ss:$16 sps:$4 sm:$0xff]   ;;  %v93_v4 = vpack.c.bf16 %v92_v3, %v92_v3  ;;  %v1605_v5 = vld [vmem:[#allocation5 + $0xc] ss:$16 sps:$4 sm:$0xff]   ;;  %v1607_v6 = vld [vmem:[#allocation5 + $0x8] ss:$16 sps:$4 sm:$0xff]  }
  0x5d   :  { %144 = vmatprep.subr.bf16.mxu0 %v1602_v1  ;;  %vm140_vm0 = vcmask 130048   ;;  %v1608_v7 = vld [vmem:[#allocation8] ss:$12 sps:$4 sm:$0xff]   ;;  %185 = vmatprep.subr.bf16.mxu1 %v1605_v5  ;;  %v1610_v8 = vld [vmem:[#allocation8 + $0x4] ss:$12 sps:$4 sm:$0xff]   ;;  %v2017_v58 = vshrl.u32 %v100_v57, 7 }
  0x5e   :  { %145 = vmatpush1.bf16.msra.mxu0 %v1604_v2  ;;  %186 = vmatpush1.bf16.msra.mxu1 %v1607_v6  ;;  %v1613_v9 = vld [vmem:[#allocation8 + $0x1c] ss:$12 sps:$4 sm:$0xff]   ;;  %v1611_v10 = vld [vmem:[#allocation8 + $0x18] ss:$12 sps:$4 sm:$0xff]   ;;  %v1616_v11 = vld [vmem:[#allocation8 + $0x34] ss:$12 sps:$4 sm:$0xff]  }
  0x5f   :  { %891 = vmatprep.subr.bf16.mxu0 %v1610_v8  ;;  %v1614_v12 = vld [vmem:[#allocation8 + $0x30] ss:$12 sps:$4 sm:$0xff]   ;;  %v1619_v13 = vld [vmem:[#allocation8 + $0x4c] ss:$12 sps:$4 sm:$0xff]   ;;  %v1617_v14 = vld [vmem:[#allocation8 + $0x48] ss:$12 sps:$4 sm:$0xff]  }
  0x60   :  { %v1622_v15 = vld [vmem:[#allocation8 + $0x64] ss:$12 sps:$4 sm:$0xff]   ;;  %v1635_v16 = vld [vmem:[#allocation8 + $0xc8] ss:$12 sps:$4 sm:$0xff]   ;;  %v1620_v18 = vld [vmem:[#allocation8 + $0x60] ss:$12 sps:$4 sm:$0xff]  }
  0x61   :  { %1363 = vmatmul.mubr.msk.bf16.vlgmr.msra.gmra.mrb[0].mxu0 %vm140_vm0, %v93_v4  ;;  %1364 = vmatmul.mubr.msk.bf16.vlgmr.msra.gmra.mrb[0].mxu1 %vm140_vm0, %v93_v4  ;;  %v1636_v17 = vld [vmem:[#allocation8 + $0x8] ss:$12 sps:$4 sm:$0xff]   ;;  %v1640_v20 = vld [vmem:[#allocation8 + $0xe0] ss:$12 sps:$4 sm:$0xff]   ;;  %v1623_v22 = vld [vmem:[#allocation8 + $0x78] ss:$12 sps:$4 sm:$0xff]  }
  0x62   :  { %892 = vmatpush1.bf16.msra.mxu0 %v1608_v7  ;;  %1486 = vmatprep.subr.bf16.mxu1 %v1635_v16  ;;  %v1625_v19 = vld [vmem:[#allocation8 + $0x7c] ss:$12 sps:$4 sm:$0xff]   ;;  %v1641_v21 = vld [vmem:[#allocation8 + $0x20] ss:$12 sps:$4 sm:$0xff]   ;;  %v1645_v23 = vld [vmem:[#allocation8 + $0xf8] ss:$12 sps:$4 sm:$0xff]  }
  0x63   :  { %893 = vmatprep.subr.bf16.mxu0 %v1613_v9  ;;  %1487 = vmatpush3.bf16.msra.mxu1 %v1636_v17  ;;  %v1646_v24 = vld [vmem:[#allocation8 + $0x38] ss:$12 sps:$4 sm:$0xff]   ;;  %v1628_v25 = vld [vmem:[#allocation8 + $0x94] ss:$12 sps:$4 sm:$0xff]   ;;  %v1650_v26 = vld [vmem:[#allocation8 + $0x110] ss:$12 sps:$4 sm:$0xff]  }
  0x64   :  { %1488 = vmatprep.subr.bf16.mxu1 %v1640_v20  ;;  %v1651_v27 = vld [vmem:[#allocation8 + $0x50] ss:$12 sps:$4 sm:$0xff]   ;;  %v1631_v29 = vld [vmem:[#allocation8 + $0xac] ss:$12 sps:$4 sm:$0xff]   ;;  %v1655_v30 = vld [vmem:[#allocation8 + $0x128] ss:$12 sps:$4 sm:$0xff]  }
  0x65   :  { %v1626_v28 = vld [vmem:[#allocation8 + $0x90] ss:$12 sps:$4 sm:$0xff]   ;;  %v1656_v31 = vld [vmem:[#allocation8 + $0x68] ss:$12 sps:$4 sm:$0xff]   ;;  %v1660_v34 = vld [vmem:[#allocation8 + $0x140] ss:$12 sps:$4 sm:$0xff]  }
  0x66   :  { %894 = vmatpush1.bf16.msra.mxu0 %v1611_v10  ;;  %v1629_v32 = vld [vmem:[#allocation8 + $0xa8] ss:$12 sps:$4 sm:$0xff]   ;;  %v1634_v33 = vld [vmem:[#allocation8 + $0xc4] ss:$12 sps:$4 sm:$0xff]   ;;  %v1632_v35 = vld [vmem:[#allocation8 + $0xc0] ss:$12 sps:$4 sm:$0xff]  }
  0x67   :  { %895 = vmatprep.subr.bf16.mxu0 %v1616_v11  ;;  %1489 = vmatpush3.bf16.msra.mxu1 %v1641_v21  ;;  %v1661_v36 = vld [vmem:[#allocation8 + $0x80] ss:$12 sps:$4 sm:$0xff]   ;;  %v1639_v37 = vld [vmem:[#allocation8 + $0xdc] ss:$12 sps:$4 sm:$0xff]   ;;  %v1637_v38 = vld [vmem:[#allocation8 + $0xd8] ss:$12 sps:$4 sm:$0xff]  }
  0x68   :  { %1490 = vmatprep.subr.bf16.mxu1 %v1645_v23  ;;  %v1644_v39 = vld [vmem:[#allocation8 + $0xf4] ss:$12 sps:$4 sm:$0xff]   ;;  %v1642_v40 = vld [vmem:[#allocation8 + $0xf0] ss:$12 sps:$4 sm:$0xff]   ;;  %v1649_v41 = vld [vmem:[#allocation8 + $0x10c] ss:$12 sps:$4 sm:$0xff]  }
  0x69   :  { %v1647_v42 = vld [vmem:[#allocation8 + $0x108] ss:$12 sps:$4 sm:$0xff]   ;;  %v1654_v43 = vld [vmem:[#allocation8 + $0x124] ss:$12 sps:$4 sm:$0xff]   ;;  %v1652_v44 = vld [vmem:[#allocation8 + $0x120] ss:$12 sps:$4 sm:$0xff]  }
  0x6a   :  { %896 = vmatpush1.bf16.msra.mxu0 %v1614_v12  ;;  %v1659_v45 = vld [vmem:[#allocation8 + $0x13c] ss:$12 sps:$4 sm:$0xff]   ;;  %v1657_v46 = vld [vmem:[#allocation8 + $0x138] ss:$12 sps:$4 sm:$0xff]   ;;  %v1664_v47 = vld [vmem:[#allocation8 + $0x154] ss:$12 sps:$4 sm:$0xff]  }
  0x6b   :  { %897 = vmatprep.subr.bf16.mxu0 %v1619_v13  ;;  %1491 = vmatpush3.bf16.msra.mxu1 %v1646_v24  ;;  %v1665_v48 = vld [vmem:[#allocation8 + $0x158] ss:$12 sps:$4 sm:$0xff]   ;;  %v1662_v49 = vld [vmem:[#allocation8 + $0x150] ss:$12 sps:$4 sm:$0xff]   ;;  %v1667_v53 = vld [vmem:[#allocation8 + $0x168] ss:$12 sps:$4 sm:$0xff]  }
  0x6c   :  { %1492 = vmatprep.subr.bf16.mxu1 %v1650_v26  ;;  %v1666_v50 = vld [vmem:[#allocation8 + $0x98] ss:$12 sps:$4 sm:$0xff]   ;;  %v1670_v52 = vld [vmem:[#allocation8 + $0x170] ss:$12 sps:$4 sm:$0xff]   ;;  %v1675_v56 = vld [vmem:[#allocation8 + $0x248] ss:$12 sps:$4 sm:$0xff]  }
  0x6d   :  { %v1669_v51 = vld [vmem:[#allocation8 + $0x16c] ss:$12 sps:$4 sm:$0xff]   ;;  %v1671_v54 = vld [vmem:[#allocation8 + $0xb0] ss:$12 sps:$4 sm:$0xff]   ;;  %v102_v59 = vsub.s32 0, %v2017_v58  ;;  %v106_v61 = vsub.s32 1, %v2017_v58 }
  0x6e   :  { %898 = vmatpush1.bf16.msra.mxu0 %v1617_v14  ;;  %v1674_v55 = vld [vmem:[#allocation8 + $0x184] ss:$12 sps:$4 sm:$0xff]   ;;  %v2020_v60 = vld [vmem:[#allocation7] sm:$0xf]  ;;  %v114_v62 = vsub.s32 3, %v2017_v58  ;;  %vm1915_vm1 = vmmov 0  }
  0x6f   :  { %899 = vmatprep.subr.bf16.mxu0 %v1622_v15  ;;  %1493 = vmatpush3.bf16.msra.mxu1 %v1651_v27  ;;  %v103_v63 = vrot.slane %v2020_v60, %v102_v59  ;;  %v107_v0 = vrot.slane %v2020_v60, %v106_v61  ;;  %v1672_v16 = vld [vmem:[#allocation8 + $0x180] ss:$12 sps:$4 sm:$0xff]   ;;  %v1676_v17 = vld [vmem:[#allocation8 + $0x188] ss:$12 sps:$4 sm:$0xff]   ;;  %v1677_v23 = vld [vmem:[#allocation8 + $0x198] ss:$12 sps:$4 sm:$0xff]  }
  0x70   :  { %1494 = vmatprep.subr.bf16.mxu1 %v1655_v30  ;;  %v115_v2 = vrot.slane %v2020_v60, %v114_v62  ;;  %v1679_v20 = vld [vmem:[#allocation8 + $0x19c] ss:$12 sps:$4 sm:$0xff]   ;;  %v1680_v21 = vld [vmem:[#allocation8 + $0x260] ss:$12 sps:$4 sm:$0xff]   ;;  %v1685_v26 = vld [vmem:[#allocation8 + $0x278] ss:$12 sps:$4 sm:$0xff]  }
  0x71   :  { %v1681_v24 = vld [vmem:[#allocation8 + $0x1a0] ss:$12 sps:$4 sm:$0xff]   ;;  %v1682_v27 = vld [vmem:[#allocation8 + $0x1b0] ss:$12 sps:$4 sm:$0xff]   ;;  %v1715_v57 = vld [vmem:[#allocation8 + $0x258] ss:$12 sps:$4 sm:$0xff]  }
  0x72   :  { %900 = vmatpush1.bf16.msra.mxu0 %v1620_v18  ;;  %v1690_v30 = vld [vmem:[#allocation8 + $0x290] ss:$12 sps:$4 sm:$0xff]   ;;  %s1916_s17 = smov [#allocation11]   ;;  %vm1340_vm2 = vcmask 64512  }
  0x73   :  { %901 = vmatprep.subr.bf16.mxu0 %v1625_v19  ;;  %1495 = vmatpush3.bf16.msra.mxu1 %v1656_v31  ;;  %v1687_v31 = vld [vmem:[#allocation8 + $0x1c8] ss:$12 sps:$4 sm:$0xff]   ;;  %v1718_v62 = vld [vmem:[#allocation8 + $0x270] ss:$12 sps:$4 sm:$0xff]   ;;  %s1348_s18 = sshll.u32 %s1916_s17, 4  ;;  %s1349_s18 = int_to_ptr.vmem [resolvable:$true] %s1348_s18 }
  0x74   :  { %1496 = vmatprep.subr.bf16.mxu1 %v1660_v34  ;;  %v1695_v34 = vld [vmem:[#allocation8 + $0x2a8] ss:$12 sps:$4 sm:$0xff]   ;;  %s1872_s19 = scalar_lea.vmem %s1349_s18, 128  ;;  %p1877_p13 = scmp.lt.s32.totalorder %s1349_s18, %s1349_s18 }
  0x75   :  { %p1873_p12 = scmp.ne.s32.totalorder %s1349_s18, %s1872_s19  ;;  %p1878_p0 = scmp.lt.s32.totalorder %s1872_s19, %s1872_s19 }
  0x76   :  { %902 = vmatpush1.bf16.msra.mxu0 %v1623_v22 }
  0x77   :  { %903 = vmatprep.subr.bf16.mxu0 %v1628_v25  ;;  %1497 = vmatpush3.bf16.msra.mxu1 %v1661_v36  ;;  %v1684_v25 = vld [vmem:[#allocation8 + $0x1b4] ss:$12 sps:$4 sm:$0xff]   ;;  %p1879_p1 = por %p1878_p0, %p1877_p13 }
  0x78   :  { %1498 = vmatprep.subr.bf16.mxu1 %v1665_v48  ;;  %v1692_v36 = vld [vmem:[#allocation8 + $0x1e0] ss:$12 sps:$4 sm:$0xff]  }
  0x79   :  { %v1709_v48 = vld [vmem:[#allocation8 + $0x22c] ss:$12 sps:$4 sm:$0xff]   ;;  %p1880_p2 = pnand %p1879_p1, %p1873_p12 }
  0x7a   :  { %904 = vmatpush1.bf16.msra.mxu0 %v1626_v28  ;;  %v1686_v28 = vld [vmem:[#allocation8 + $0x1b8] ss:$12 sps:$4 sm:$0xff]  }
  0x7b   :  { %905 = vmatprep.subr.bf16.mxu0 %v1631_v29  ;;  %1499 = vmatpush3.bf16.msra.mxu1 %v1666_v50  ;;  %v1689_v29 = vld [vmem:[#allocation8 + $0x1cc] ss:$12 sps:$4 sm:$0xff]  }
  0x7c   :  { %1500 = vmatprep.subr.bf16.mxu1 %v1670_v52  ;;  %v1711_v52 = vld [vmem:[#allocation8 + $0x230] ss:$12 sps:$4 sm:$0xff]  }
  0x7e   :  { %906 = vmatpush1.bf16.msra.mxu0 %v1629_v32  ;;  %v1691_v32 = vld [vmem:[#allocation8 + $0x1d0] ss:$12 sps:$4 sm:$0xff]  }
  0x7f   :  { %907 = vmatprep.subr.bf16.mxu0 %v1634_v33  ;;  %1501 = vmatpush3.bf16.msra.mxu1 %v1671_v54  ;;  %v1694_v33 = vld [vmem:[#allocation8 + $0x1e4] ss:$12 sps:$4 sm:$0xff]  }
  0x80   :  { %1508 = vmatprep.subr.bf16.mxu1 %v1675_v56  ;;  %v1717_v56 = vld [vmem:[#allocation8 + $0x25c] ss:$12 sps:$4 sm:$0xff]  }
  0x82   :  { %908 = vmatpush1.bf16.msra.mxu0 %v1632_v35  ;;  %v110_v35 = vsub.s32 2, %v2017_v58  ;;  %v1754_v58 = vld [vmem:[#allocation10 + $0x90] sm:$0xff]  }
  0x83   :  { %909 = vmatprep.subr.bf16.mxu0 %v1639_v37  ;;  %v1696_v37 = vld [vmem:[#allocation8 + $0x1e8] ss:$12 sps:$4 sm:$0xff]  }
  0x86   :  { %910 = vmatpush1.bf16.msra.mxu0 %v1637_v38  ;;  %v1699_v38 = vld [vmem:[#allocation8 + $0x1fc] ss:$12 sps:$4 sm:$0xff]  }
  0x87   :  { %911 = vmatprep.subr.bf16.mxu0 %v1644_v39  ;;  %v1700_v39 = vld [vmem:[#allocation8 + $0x2c0] ss:$12 sps:$4 sm:$0xff]  }
  0x8a   :  { %912 = vmatpush1.bf16.msra.mxu0 %v1642_v40  ;;  %v111_v40 = vrot.slane %v2020_v60, %v110_v35  ;;  %v1720_v60 = vld [vmem:[#allocation8 + $0x274] ss:$12 sps:$4 sm:$0xff]  }
  0x8b   :  { %913 = vmatprep.subr.bf16.mxu0 %v1649_v41  ;;  %v1697_v41 = vld [vmem:[#allocation8 + $0x1f8] ss:$12 sps:$4 sm:$0xff]  }
  0x8e   :  { %914 = vmatpush1.bf16.msra.mxu0 %v1647_v42  ;;  %v1701_v42 = vld [vmem:[#allocation8 + $0x200] ss:$12 sps:$4 sm:$0xff]  }
  0x8f   :  { %915 = vmatprep.subr.bf16.mxu0 %v1654_v43  ;;  %v1704_v43 = vld [vmem:[#allocation8 + $0x214] ss:$12 sps:$4 sm:$0xff]  }
  0x92   :  { %916 = vmatpush1.bf16.msra.mxu0 %v1652_v44  ;;  %v1705_v44 = vld [vmem:[#allocation8 + $0x2d8] ss:$12 sps:$4 sm:$0xff]  }
  0x93   :  { %917 = vmatprep.subr.bf16.mxu0 %v1659_v45 }
  0x96   :  { %918 = vmatpush1.bf16.msra.mxu0 %v1657_v46  ;;  %v1702_v46 = vld [vmem:[#allocation8 + $0x210] ss:$12 sps:$4 sm:$0xff]  }
  0x97   :  { %919 = vmatprep.subr.bf16.mxu0 %v1664_v47  ;;  %v1706_v47 = vld [vmem:[#allocation8 + $0x218] ss:$12 sps:$4 sm:$0xff]  }
  0x9a   :  { %920 = vmatpush1.bf16.msra.mxu0 %v1662_v49  ;;  %v1710_v49 = vld [vmem:[#allocation8 + $0x2f0] ss:$12 sps:$4 sm:$0xff]  }
  0x9b   :  { %921 = vmatprep.subr.bf16.mxu0 %v1669_v51  ;;  %v1707_v51 = vld [vmem:[#allocation8 + $0x228] ss:$12 sps:$4 sm:$0xff]  }
  0x9e   :  { %922 = vmatpush1.bf16.msra.mxu0 %v1667_v53  ;;  %v1714_v53 = vld [vmem:[#allocation8 + $0x244] ss:$12 sps:$4 sm:$0xff]  }
  0x9f   :  { %932 = vmatprep.subr.bf16.mxu0 %v1674_v55  ;;  %v1712_v55 = vld [vmem:[#allocation8 + $0x240] ss:$12 sps:$4 sm:$0xff]  }
 0x134   :  { %v178_v1 = vpop.f32.mrb[0].mxu0  ;;  %v2031_v7 = vpop.f32.mrb[0].mxu1 }
 0x135   :  { %v179_v3 = vadd.f32 %v178_v1, %v103_v63  ;;  %v180_v4 = vpop.f32.mrb[1].mxu0  ;;  %v221_v10 = vpop.f32.mrb[1].mxu1  ;;  %v220_v45 = vadd.f32 %v2031_v7, %v111_v40  ;;  %v1723_v63 = vld [vmem:[#allocation8 + $0x28c] ss:$12 sps:$4 sm:$0xff]   ;;  %v1726_v1 = vld [vmem:[#allocation8 + $0x2a4] ss:$12 sps:$4 sm:$0xff]  }
 0x136   :  { %v181_v5 = vadd.f32 %v180_v4, %v107_v0  ;;  %v182_v6 = vpop.f32.mrb[2].mxu0  ;;  %v222_v12 = vadd.f32 %v221_v10, %v115_v2  ;;  %v223_v13 = vpop.f32.mrb[2].mxu1  ;;  %v1721_v0 = vld [vmem:[#allocation8 + $0x288] ss:$12 sps:$4 sm:$0xff]   ;;  %v1724_v2 = vld [vmem:[#allocation8 + $0x2a0] ss:$12 sps:$4 sm:$0xff]  }
 0x137   :  { %v226_v8 = vmax.f32 %v179_v3, 0.0  ;;  %v183_v9 = vpop.f32.mrb[3].mxu0  ;;  %v224_v14 = vpop.f32.mrb[3].mxu1  ;;  %v228_v50 = vmax.f32 %v220_v45, 0.0  ;;  %v1729_v3 = vld [vmem:[#allocation8 + $0x2bc] ss:$12 sps:$4 sm:$0xff]  }
 0x138   :  { %v227_v11 = vmax.f32 %v181_v5, 0.0  ;;  %v229_v18 = vmax.f32 %v222_v12, 0.0  ;;  %v1727_v4 = vld [vmem:[#allocation8 + $0x2b8] ss:$12 sps:$4 sm:$0xff]   ;;  %v1732_v5 = vld [vmem:[#allocation8 + $0x2d4] ss:$12 sps:$4 sm:$0xff]  }
 0x139   :  { %v230_v19 = vpack.c.bf16 %v226_v8, %v226_v8  ;;  %v232_v54 = vpack.c.bf16 %v228_v50, %v228_v50  ;;  %v1730_v6 = vld [vmem:[#allocation8 + $0x2d0] ss:$12 sps:$4 sm:$0xff]   ;;  %v1735_v7 = vld [vmem:[#allocation8 + $0x2ec] ss:$12 sps:$4 sm:$0xff]   ;;  %v1733_v8 = vld [vmem:[#allocation8 + $0x2e8] ss:$12 sps:$4 sm:$0xff]  }
 0x13a   :  { %v231_v15 = vpack.c.bf16 %v227_v11, %v227_v11  ;;  %v233_v22 = vpack.c.bf16 %v229_v18, %v229_v18  ;;  %v1736_v9 = vld [vmem:[#allocation10 + $0x40] sm:$0xff]   ;;  %v1738_v11 = vld [vmem:[#allocation10 + $0x48] sm:$0xff]   ;;  %v1740_v13 = vld [vmem:[#allocation10 + $0x50] sm:$0xff]  }
 0x13b   :  { %v1737_v10 = vld [vmem:[#allocation10] sm:$0xff]   ;;  %v1739_v12 = vld [vmem:[#allocation10 + $0x8] sm:$0xff]   ;;  %v1741_v14 = vld [vmem:[#allocation10 + $0x10] sm:$0xff]  }
 0x13c   :  { %923 = vmatprep.mubr.bf16.mxu0 %v231_v15  ;;  %1005 = vmatprep.mubr.bf16.mxu1 %v231_v15  ;;  %v1742_v15 = vld [vmem:[#allocation10 + $0x58] sm:$0xff]   ;;  %v1745_v18 = vld [vmem:[#allocation10 + $0x20] sm:$0xff]  }
 0x13d   :  { %924 = vmatmul.mubr.bf16.vlgmr.msra.gmra.mrb[4].mxu0 %v230_v19  ;;  %1006 = vmatmul.mubr.bf16.vlgmr.msra.gmra.mrb[4].mxu1 %v230_v19  ;;  %v1746_v19 = vld [vmem:[#allocation10 + $0x68] sm:$0xff]  }
 0x13e   :  { %933 = vmatpush1.bf16.msra.mxu0 %v1672_v16  ;;  %1509 = vmatpush3.bf16.msra.mxu1 %v1676_v17  ;;  %v1743_v16 = vld [vmem:[#allocation10 + $0x18] sm:$0xff]   ;;  %v1744_v17 = vld [vmem:[#allocation10 + $0x60] sm:$0xff]  }
 0x13f   :  { %934 = vmatprep.subr.bf16.mxu0 %v1679_v20  ;;  %1510 = vmatprep.subr.bf16.mxu1 %v1680_v21  ;;  %v1747_v20 = vld [vmem:[#allocation10 + $0x28] sm:$0xff]   ;;  %v1748_v21 = vld [vmem:[#allocation10 + $0x70] sm:$0xff]  }
 0x140   :  { %1045 = vmatprep.mubr.bf16.mxu1 %v233_v22  ;;  %964 = vmatprep.mubr.bf16.mxu0 %v233_v22  ;;  %v1749_v22 = vld [vmem:[#allocation10 + $0x30] sm:$0xff]  }
 0x142   :  { %935 = vmatpush1.bf16.msra.mxu0 %v1677_v23  ;;  %1511 = vmatpush3.bf16.msra.mxu1 %v1681_v24  ;;  %v1750_v23 = vld [vmem:[#allocation10 + $0x78] sm:$0xff]  }
 0x143   :  { %936 = vmatprep.subr.bf16.mxu0 %v1684_v25  ;;  %1512 = vmatprep.subr.bf16.mxu1 %v1685_v26  ;;  %v1751_v24 = vld [vmem:[#allocation10 + $0x38] sm:$0xff]   ;;  %v1914_v25 = vmov 0.0  }
 0x146   :  { %937 = vmatpush1.bf16.msra.mxu0 %v1682_v27  ;;  %1513 = vmatpush3.bf16.msra.mxu1 %v1686_v28 }
 0x147   :  { %938 = vmatprep.subr.bf16.mxu0 %v1689_v29  ;;  %1514 = vmatprep.subr.bf16.mxu1 %v1690_v30 }
 0x14a   :  { %939 = vmatpush1.bf16.msra.mxu0 %v1687_v31  ;;  %1515 = vmatpush3.bf16.msra.mxu1 %v1691_v32  ;;  %v362_v31 = vld [vmem:[%s2066_s4] sm:$0x7] }
 0x14b   :  { %940 = vmatprep.subr.bf16.mxu0 %v1694_v33  ;;  %1516 = vmatprep.subr.bf16.mxu1 %v1695_v34  ;;  %v375_v32 = vrot.slane %v362_v31, %v110_v35 }
 0x14e   :  { %941 = vmatpush1.bf16.msra.mxu0 %v1692_v36  ;;  %1517 = vmatpush3.bf16.msra.mxu1 %v1696_v37 }
 0x14f   :  { %942 = vmatprep.subr.bf16.mxu0 %v1699_v38  ;;  %1518 = vmatprep.subr.bf16.mxu1 %v1700_v39 }
 0x152   :  { %943 = vmatpush1.bf16.msra.mxu0 %v1697_v41  ;;  %1519 = vmatpush3.bf16.msra.mxu1 %v1701_v42  ;;  %v367_v41 = vrot.slane %v362_v31, %v102_v59  ;;  %v371_v42 = vrot.slane %v362_v31, %v106_v61  ;;  %v1755_v59 = vld [vmem:[#allocation10 + $0x98] sm:$0xff]   ;;  %v1756_v61 = vld [vmem:[#allocation10 + $0xa0] sm:$0xff]  }
 0x153   :  { %944 = vmatprep.subr.bf16.mxu0 %v1704_v43  ;;  %1520 = vmatprep.subr.bf16.mxu1 %v1705_v44 }
 0x156   :  { %945 = vmatpush1.bf16.msra.mxu0 %v1702_v46  ;;  %1521 = vmatpush3.bf16.msra.mxu1 %v1706_v47 }
 0x157   :  { %946 = vmatprep.subr.bf16.mxu0 %v1709_v48  ;;  %1522 = vmatprep.subr.bf16.mxu1 %v1710_v49 }
 0x15a   :  { %947 = vmatpush1.bf16.msra.mxu0 %v1707_v51  ;;  %1523 = vmatpush3.bf16.msra.mxu1 %v1711_v52  ;;  %v1752_v51 = vld [vmem:[#allocation10 + $0x80] sm:$0xff]  }
 0x15b   :  { %948 = vmatprep.subr.bf16.mxu0 %v1714_v53  ;;  %1530 = vmatprep.subr.bf16.mxu1 %v1736_v9  ;;  %v1753_v53 = vld [vmem:[#allocation10 + $0x88] sm:$0xff]  }
 0x15d   :  { %1046 = vmatmul.mubr.bf16.vlgmr.msra.gmra.mrb[8].mxu1 %v232_v54 }
 0x15e   :  { %949 = vmatpush1.bf16.msra.mxu0 %v1712_v55  ;;  %1531 = vmatpush3.bf16.msra.mxu1 %v1737_v10  ;;  %v1758_v55 = vld [vmem:[#allocation10 + $0xb0] sm:$0xff]  }
 0x15f   :  { %950 = vmatprep.subr.bf16.mxu0 %v1717_v56  ;;  %1532 = vmatprep.subr.bf16.mxu1 %v1738_v11  ;;  %v1759_v56 = vld [vmem:[#allocation10 + $0xb8] sm:$0xff]  }
 0x162   :  { %951 = vmatpush1.bf16.msra.mxu0 %v1715_v57  ;;  %1533 = vmatpush3.bf16.msra.mxu1 %v1739_v12 }
 0x163   :  { %952 = vmatprep.subr.bf16.mxu0 %v1720_v60  ;;  %1534 = vmatprep.subr.bf16.mxu1 %v1740_v13 }
 0x166   :  { %953 = vmatpush1.bf16.msra.mxu0 %v1718_v62  ;;  %1535 = vmatpush3.bf16.msra.mxu1 %v1741_v14 }
 0x167   :  { %954 = vmatprep.subr.bf16.mxu0 %v1723_v63  ;;  %1536 = vmatprep.subr.bf16.mxu1 %v1742_v15 }
 0x16a   :  { %955 = vmatpush1.bf16.msra.mxu0 %v1721_v0  ;;  %1537 = vmatpush3.bf16.msra.mxu1 %v1743_v16 }
 0x16b   :  { %956 = vmatprep.subr.bf16.mxu0 %v1726_v1  ;;  %1538 = vmatprep.subr.bf16.mxu1 %v1744_v17 }
 0x16e   :  { %957 = vmatpush1.bf16.msra.mxu0 %v1724_v2  ;;  %1539 = vmatpush3.bf16.msra.mxu1 %v1745_v18 }
 0x16f   :  { %958 = vmatprep.subr.bf16.mxu0 %v1729_v3  ;;  %1540 = vmatprep.subr.bf16.mxu1 %v1746_v19  ;;  %v1461_v3 = vld [vmem:[%s2068_s6] ss:$0 sm:$0xff] }
 0x172   :  { %959 = vmatpush1.bf16.msra.mxu0 %v1727_v4  ;;  %1541 = vmatpush3.bf16.msra.mxu1 %v1747_v20 }
 0x173   :  { %960 = vmatprep.subr.bf16.mxu0 %v1732_v5  ;;  %1542 = vmatprep.subr.bf16.mxu1 %v1748_v21 }
 0x176   :  { %961 = vmatpush1.bf16.msra.mxu0 %v1730_v6  ;;  %1543 = vmatpush3.bf16.msra.mxu1 %v1749_v22 }
 0x177   :  { %962 = vmatprep.subr.bf16.mxu0 %v1735_v7  ;;  %1544 = vmatprep.subr.bf16.mxu1 %v1750_v23 }
 0x17a   :  { %963 = vmatpush1.bf16.msra.mxu0 %v1733_v8  ;;  %1545 = vmatpush3.bf16.msra.mxu1 %v1751_v24 }
 0x17b   :  { %1561 = vmatprep.subr.bf16.mxu1 %v1914_v25 }
 0x17d   :  { %965 = vmatmul.mubr.bf16.vlgmr.msra.gmra.mrb[4].mxu0 %v232_v54  ;;  %v1757_v54 = vld [vmem:[#allocation10 + $0xa8] sm:$0xff]  }
 0x210   :  { %v1502_v26 = vpop.f32.mrb[4].mxu1 }
 0x211   :  { %v1503_v27 = vpop.f32.mrb[5].mxu1 }
 0x212   :  { %v1504_v28 = vadd.f32 %v1503_v27, %v1502_v26  ;;  %v1505_v29 = vpop.f32.mrb[6].mxu1 }
 0x213   :  { %v1506_v30 = vpop.f32.mrb[7].mxu1 }
 0x214   :  { %v1008_v36 = vadd.f32 %v1504_v28, %v375_v32 }
 0x230   :  { %v1524_v33 = vpop.f32.mrb[8].mxu1 }
 0x231   :  { %v1525_v34 = vpop.f32.mrb[9].mxu1 }
 0x232   :  { %v1526_v37 = vadd.f32 %v1525_v34, %v1524_v33  ;;  %v1527_v38 = vpop.f32.mrb[10].mxu1 }
 0x233   :  { %v1528_v39 = vpop.f32.mrb[11].mxu1 }
 0x234   :  { %v1048_v40 = vadd.f32 %v1526_v37, %v1008_v36 }
 0x236   :  { %v1055_v57 = vmax.f32 %v1048_v40, 0.0 }
 0x238   :  { %v1058_v60 = vpack.c.bf16 %v1055_v57, %v1055_v57 }
 0x250   :  { %v966_v43 = vpop.f32.mrb[4].mxu0 }
 0x251   :  { %v1581_v44 = vadd.f32 %v966_v43, %v367_v41  ;;  %v968_v45 = vpop.f32.mrb[5].mxu0 }
 0x252   :  { %v1582_v46 = vadd.f32 %v968_v45, %v371_v42  ;;  %v970_v47 = vpop.f32.mrb[6].mxu0 }
 0x253   :  { %v1053_v48 = vmax.f32 %v1581_v44, 0.0  ;;  %v971_v35 = vpop.f32.mrb[7].mxu0 }
 0x254   :  { %v1054_v49 = vmax.f32 %v1582_v46, 0.0 }
 0x255   :  { %v1056_v52 = vpack.c.bf16 %v1053_v48, %v1053_v48 }
 0x256   :  { %v1057_v50 = vpack.c.bf16 %v1054_v49, %v1054_v49 }
 0x258   :  { %1290 = vmatprep.mubr.bf16.mxu1 %v1057_v50 }
 0x259   :  { %1291 = vmatmul.mubr.bf16.vlgmr.msra.gmra.mrb[12].mxu1 %v1056_v52 }
 0x25a   :  { %1562 = vmatpush3.bf16.msra.mxu1 %v1752_v51  ;;  %1577 = vmatprep.mubr.msk.bf16.mxu1 %vm1915_vm1, %v1914_v25 }
 0x25b   :  { %1563 = vmatprep.subr.bf16.mxu1 %v1914_v25 }
 0x25e   :  { %1564 = vmatpush3.bf16.msra.mxu1 %v1753_v53 }
 0x25f   :  { %1565 = vmatprep.subr.bf16.mxu1 %v1914_v25 }
 0x262   :  { %1566 = vmatpush3.bf16.msra.mxu1 %v1754_v58 }
 0x263   :  { %1567 = vmatprep.subr.bf16.mxu1 %v1914_v25 }
 0x266   :  { %1568 = vmatpush3.bf16.msra.mxu1 %v1755_v59 }
 0x267   :  { %1569 = vmatprep.subr.bf16.mxu1 %v1914_v25 }
 0x26a   :  { %1570 = vmatpush3.bf16.msra.mxu1 %v1756_v61 }
 0x26b   :  { %1571 = vmatprep.subr.bf16.mxu1 %v1914_v25 }
 0x26e   :  { %1572 = vmatpush3.bf16.msra.mxu1 %v1757_v54 }
 0x26f   :  { %1573 = vmatprep.subr.bf16.mxu1 %v1914_v25 }
 0x272   :  { %1574 = vmatpush3.bf16.msra.mxu1 %v1758_v55 }
 0x273   :  { %1575 = vmatprep.subr.bf16.mxu1 %v1914_v25 }
 0x276   :  { %1576 = vmatpush3.bf16.msra.mxu1 %v1759_v56 }
 0x279   :  { %1578 = vmatmul.mubr.bf16.vlgmr.msra.gmra.mrb[16].mxu1 %v1058_v60 }
 0x32c   :  { %v1546_v62 = vpop.f32.mrb[12].mxu1 }
 0x32d   :  { %v1547_v63 = vpop.f32.mrb[13].mxu1 }
 0x32e   :  { %v1548_v0 = vadd.f32 %v1547_v63, %v1546_v62  ;;  %v1549_v1 = vpop.f32.mrb[14].mxu1 }
 0x32f   :  { %v1550_v2 = vpop.f32.mrb[15].mxu1 }
 0x330   :  { %v1293_v4 = vadd.f32 %v1548_v0, %v1461_v3 }
 0x34c   :  { %v1332_v5 = vpop.f32.mrb[16].mxu1 }
 0x34d   :  { %v1333_v6 = vadd.f32 %v1332_v5, %v1293_v4  ;;  %v1579_v7 = vpop.f32.mrb[17].mxu1 }
 0x34e   :  { %v1335_v8 = vpop.f32.mrb[18].mxu1 }
 0x34f   :  { %1760 = vtanh.f32 %v1333_v6  ;;  %v1580_v9 = vpop.f32.mrb[19].mxu1 }
 0x359   :  { %v1761_v10 = vpop.eup %1760 }
 0x35a   :  { %v1339_v11 = vmul.f32 2.0, %v1761_v10 }
 0x35c   :  { %1341 = vst.msk [vmem:[#allocation11] sm:$0xff] %vm1340_vm2, %v1339_v11 }
 0x35d   :  { %1883 = shalt.err (!%p1880_p2)
}
 0x35e   :  { %s1884_s21 = scalar_lea.hbm %s2069_s7, 128 }
 0x35f   :  { %p1885_p3 = scmp.ne.s32.totalorder %s2069_s7, %s1884_s21  ;;  %p1888_p4 = scmp.lt.u32.totalorder %s1884_s21, %s2069_s7 }
 0x361   :  { %p1890_p5 = pnand %p1888_p4, %p1885_p3 }
 0x363   :  { %1893 = shalt.err (!%p1890_p5)
}
 0x364   :  { %1351 = dma.vmem_to_hbm [thread:$0]  %s1349_s18, 128, %s2069_s7, [#allocation4]  }
 0x365   :  { %1900 = dma.done.wait [#allocation4], 128  }
 0x366   :  { %1901 = vsyncadd [#allocation4], 4294967168 }
 0x367   :  { %1355 = vsyncpa [#allocation3], 1 }
 0x368   :  { %1356 = vsyncpa [#allocation6], 1 }
 0x369   :  { %1357 = vsyncpa [#allocation9], 1 }
 0x36a   :  { %1358 = vsyncpa [#allocation4], 1 }

</bundles_post_ra>
